<compile_context>
chip_gen: v7x
topology: tpu7x:2x2x1
jax: 0.10.0
libtpu: 0.0.40
codegen_flags: <defaults>
</compile_context>

<pallas_src>
import functools

import jax
import jax.numpy as jnp
import numpy as np
from jax import lax
from jax.experimental import pallas as pl
from jax.experimental.pallas import tpu as pltpu


def _round_up(v, m):
    return (v + m - 1) // m * m


def _edgeconv_kernel(pre_ref, w2_ref, out_ref, *, node_tile, k_pad):
    """ReLU + second Linear + per-node max over fixed-width padded segments.

    pre_ref : VMEM (node_tile * k_pad, Dp)  layer-1 pre-activation (node-major)
    w2_ref  : VMEM (Dp, Dp)                 second Linear weight (lane-padded)
    out_ref : VMEM (node_tile, Dp)          per-node max (b2 / 0-fill in wrapper)
    """
    dp = out_ref.shape[-1]
    h = jnp.maximum(pre_ref[...], 0.0)                              # VPU, lane-dense
    y = jnp.dot(h, w2_ref[...], preferred_element_type=jnp.float32)  # MXU
    # k_pad is a multiple of 8, so this reshape keeps (8,128) tiles intact.
    y = y.reshape(node_tile, k_pad, dp)
    out_ref[...] = jnp.max(y, axis=1)                               # segmented max


def knn_graph(pos, k):
    """Matches torch_cluster.knn_graph(pos, k, batch=zeros, loop=False):
    returns (edge_index[0], edge_index[1]) = (neighbor, query).  Tie-breaking
    for duplicate positions may differ from torch_cluster."""
    # TODO(synk): replace the O(N^2) dense distance + top_k with a blocked
    # top-k (or precomputed graph) for large N; it dominates end-to-end there.
    n = pos.shape[0]
    d2 = jnp.sum((pos[:, None, :] - pos[None, :, :]) ** 2, axis=-1)
    d2 = jnp.where(jnp.eye(n, dtype=bool), jnp.inf, d2)             # loop=False
    _, nbr = lax.top_k(-d2, k)                                      # (N, k)
    edge_src = nbr.reshape(-1).astype(jnp.int32)                    # edge_index[0]
    edge_dst = jnp.repeat(jnp.arange(n, dtype=jnp.int32), k)        # edge_index[1]
    return edge_src, edge_dst


def edge_conv_block(x, pos, params, k=16, target_edge_rows=512):
    """Pallas implementation of EdgeConvBlock.forward."""
    n, cin = x.shape
    w1, b1, w2, b2 = params
    d = w2.shape[1]

    edge_src, edge_dst = knn_graph(pos, k)

    # Sort edges by the scatter target so each node's edges are contiguous.
    order = jnp.argsort(edge_src)
    ssrc = edge_src[order]
    sdst = edge_dst[order]

    counts = jnp.bincount(ssrc, length=n).astype(jnp.int32)         # in-degree (N,)
    offsets = jnp.concatenate([jnp.zeros((1,), jnp.int32),
                               jnp.cumsum(counts).astype(jnp.int32)])

    # Fixed-width segments: pad each node's edge list to k_pad rows by
    # replicating its first edge (max unaffected); degree-0 nodes get a dummy
    # edge and are zero-filled in the wrapper epilogue.
    # TODO(synk): k_pad comes from the concrete max in-degree, so this wrapper
    # runs eagerly; pass a static bound to use it under jit.
    max_deg = int(jax.device_get(jnp.max(counts)))
    k_pad = max(8, _round_up(max(max_deg, 1), 8))

    j_grid = jnp.arange(k_pad, dtype=jnp.int32)[None, :]             # (1, k_pad)
    base = offsets[:-1][:, None]                                     # (N, 1)
    valid = j_grid < counts[:, None]                                 # (N, k_pad)
    gidx = jnp.where(valid, base + j_grid, base)
    gidx = jnp.where(counts[:, None] > 0, gidx, 0).reshape(-1)       # (N*k_pad,)
    src_idx = ssrc[gidx]
    dst_idx = sdst[gidx]

    # Linearity of the first layer: per-node projections computed once.
    # b1 is folded into pa (pre-ReLU); b2 commutes with max -> wrapper epilogue.
    w1a, w1b = w1[:cin], w1[cin:]
    pa = x @ (w1a - w1b) + b1[None, :]                               # (N, D)
    pb = x @ w1b                                                     # (N, D)
    pre = pa[src_idx] + pb[dst_idx]                                  # (N*k_pad, D)
    # TODO(synk): for memory-bound sizes, stream pre in bf16 (kept f32 here to
    # match the f32 torch reference at 1e-4 tolerance).

    # Lane-pad the feature dim to a multiple of 128 -> unmasked stores, dense MXU.
    dp = _round_up(d, 128)
    if dp > d:
        pre = jnp.pad(pre, ((0, 0), (0, dp - d)))
    w2p = jnp.zeros((dp, dp), jnp.float32).at[:d, :d].set(w2)

    # Node tiling: ~target_edge_rows padded edges per grid step.
    node_tile = max(8, (max(1, target_edge_rows // k_pad) // 8) * 8)
    node_tile = min(node_tile, _round_up(n, 8))
    n_pad = _round_up(n, node_tile)
    if n_pad > n:
        pre = jnp.pad(pre, ((0, (n_pad - n) * k_pad), (0, 0)))
    num_tiles = n_pad // node_tile

    kernel = functools.partial(_edgeconv_kernel, node_tile=node_tile, k_pad=k_pad)

    cost = pl.CostEstimate(
        flops=2 * n_pad * k_pad * dp * dp,
        transcendentals=0,
        bytes_accessed=4 * (n_pad * k_pad * dp + n_pad * dp + dp * dp))

    out_pad = pl.pallas_call(
        kernel,
        out_shape=jax.ShapeDtypeStruct((n_pad, dp), jnp.float32),
        grid_spec=pltpu.PrefetchScalarGridSpec(
            num_scalar_prefetch=0,
            grid=(num_tiles,),
            in_specs=[
                pl.BlockSpec((node_tile * k_pad, dp), lambda i: (i, 0)),  # pre
                pl.BlockSpec((dp, dp), lambda i: (0, 0)),                 # w2
            ],
            out_specs=pl.BlockSpec((node_tile, dp), lambda i: (i, 0)),
        ),
        compiler_params=pltpu.CompilerParams(
            # Disjoint node blocks per step -> safe for megacore on v7x.
            dimension_semantics=("parallel",),
            vmem_limit_bytes=48 * 1024 * 1024),
        cost_estimate=cost,
    )(pre, w2p)

    out = out_pad[:n, :d]
    # torch_scatter.scatter_max semantics: empty segments -> 0; add folded b2.
    return jnp.where(counts[:, None] > 0, out + b2[None, :], 0.0)


def edge_conv_reference(x, pos, params, k=16):
    """Pure-JAX reference mirroring the torch forward."""
    n = x.shape[0]
    w1, b1, w2, b2 = params
    edge_src, edge_dst = knn_graph(pos, k)
    xi = x[edge_src]
    xj = x[edge_dst]
    ef = jnp.concatenate([xi, xj - xi], axis=1)
    h = jax.nn.relu(ef @ w1 + b1)
    y = h @ w2 + b2
    out = jax.ops.segment_max(y, edge_src, num_segments=n)
    return jnp.where(jnp.isneginf(out), 0.0, out)


if __name__ == "__main__":
    key = jax.random.PRNGKey(0)
    k_x, k_pos, k_w1, k_b1, k_w2, k_b2 = jax.random.split(key, 6)

    N, IN_DIM, OUT_DIM, K = 64, 8, 32, 8

    x = jax.random.normal(k_x, (N, IN_DIM), dtype=jnp.float32)
    pos = jax.random.normal(k_pos, (N, 3), dtype=jnp.float32)

    # Parameters: nn.Linear(2*in, out) and nn.Linear(out, out), stored transposed.
    w1 = jax.random.normal(k_w1, (2 * IN_DIM, OUT_DIM), dtype=jnp.float32) * 0.2
    b1 = jax.random.normal(k_b1, (OUT_DIM,), dtype=jnp.float32) * 0.1
    w2 = jax.random.normal(k_w2, (OUT_DIM, OUT_DIM), dtype=jnp.float32) * 0.2
    b2 = jax.random.normal(k_b2, (OUT_DIM,), dtype=jnp.float32) * 0.1
    params = (w1, b1, w2, b2)

    out = jax.block_until_ready(edge_conv_block(x, pos, params, k=K))
    ref = jax.block_until_ready(edge_conv_reference(x, pos, params, k=K))

    assert out.shape == (N, OUT_DIM)
    np.testing.assert_allclose(np.asarray(out), np.asarray(ref), rtol=1e-4, atol=1e-4)
    print("KERNEL_OK")
</pallas_src>

<mosaic_0001>
module attributes {stable_mosaic.version = 11 : i64} {
  func.func @_edgeconv_kernel(%arg0: i32, %arg1: memref<512x128xf32, #tpu.memory_space<vmem>>, %arg2: memref<128x128xf32, #tpu.memory_space<vmem>>, %arg3: memref<32x128xf32, #tpu.memory_space<vmem>>) attributes {dimension_semantics = [#tpu.dimension_semantics<parallel>], iteration_bounds = array<i64: 2>, scalar_prefetch = 0 : i64, scratch_operands = 0 : i64, tpu.core_type = #tpu.core_type<tc>, window_params = [{transform_indices = @transform_0, window_bounds = array<i64: 512, 128>}, {pipeline_mode = #tpu.pipeline_mode<synchronous>, transform_indices = @transform_1, window_bounds = array<i64: 128, 128>}, {transform_indices = @transform_2, window_bounds = array<i64: 32, 128>}]} {
    %c0 = arith.constant 0 : index
    %c0_0 = arith.constant 0 : index
    %0 = vector.load %arg1[%c0, %c0_0] : memref<512x128xf32, #tpu.memory_space<vmem>>, vector<512x128xf32>
    %cst = arith.constant 0.000000e+00 : f32
    %1 = vector.broadcast %cst : f32 to vector<512x128xf32>
    %2 = arith.maximumf %0, %1 : vector<512x128xf32>
    %c0_1 = arith.constant 0 : index
    %c0_2 = arith.constant 0 : index
    %3 = vector.load %arg2[%c0_1, %c0_2] : memref<128x128xf32, #tpu.memory_space<vmem>>, vector<128x128xf32>
    %cst_3 = arith.constant dense<0.000000e+00> : vector<512x128xf32>
    %4 = tpu.matmul %2, %3, %cst_3 {dimension_numbers = #tpu.dot_dimension_numbers<[1], [0], [0], [1], [0, 0, 1, 1], [], []>} : vector<512x128xf32>, vector<128x128xf32>, vector<512x128xf32> -> vector<512x128xf32>
    %5 = vector.shape_cast %4 : vector<512x128xf32> to vector<32x16x128xf32>
    %cst_4 = arith.constant dense<0xFF800000> : vector<32x128xf32>
    %6 = vector.multi_reduction <maximumf>, %5, %cst_4 [1] : vector<32x16x128xf32> to vector<32x128xf32>
    %c0_5 = arith.constant 0 : index
    %c0_6 = arith.constant 0 : index
    %7 = vector.load %arg3[%c0_5, %c0_6] : memref<32x128xf32, #tpu.memory_space<vmem>>, vector<32x128xf32>
    tpu.vector_store %arg3[%c0_5, %c0_6], %6 {strides = array<i32>} : memref<32x128xf32, #tpu.memory_space<vmem>>, vector<32x128xf32>,
    return
  }
  func.func @transform_0(%arg0: i32) -> (i32, i32) {
    %c0_i32 = arith.constant 0 : i32
    %c0_i32_0 = arith.constant 0 : i32
    return %arg0, %c0_i32 : i32, i32
  }
  func.func @transform_1(%arg0: i32) -> (i32, i32) {
    %c0_i32 = arith.constant 0 : i32
    %c0_i32_0 = arith.constant 0 : i32
    %c0_i32_1 = arith.constant 0 : i32
    return %c0_i32, %c0_i32_0 : i32, i32
  }
  func.func @transform_2(%arg0: i32) -> (i32, i32) {
    %c0_i32 = arith.constant 0 : i32
    %c0_i32_0 = arith.constant 0 : i32
    return %arg0, %c0_i32 : i32, i32
  }
}

</mosaic_0001>

<bundles_post_ra>
// kernel: tpu_custom_call.1
= control target key start
LH: loop header
LB: loop body
LE: loop exit
PB: predicated region body
PF: predicated region fallthrough
CT: control target
= control target key end

     0   :  { %7 = vsyncpa [#allocation3], 0  ;;  %s1902_s0 = inlined_call_operand.hbm [shape: f32[1024,128], index: 0, kind: input, shape index: {}]   ;;  %s1903_s1 = inlined_call_operand.hbm [shape: f32[128,128], index: 1, kind: input, shape index: {}]   ;;  %s1904_s2 = inlined_call_operand.hbm [shape: f32[64,128], index: 2, kind: output, shape index: {}]  }
   0x1   :  { %9 = vsyncpa [#allocation3 + $0x1], 0 }
   0x2   :  { %10 = vsyncpa [#allocation6], 0 }
   0x3   :  { %11 = vsyncpa [#allocation4], 0 }
   0x4   :  { %13 = vsyncpa [#allocation4 + $0x1], 0  ;;  %s1591_s9 = smov 0   ;;  %s1593_s10 = smov 0  }
   0x5   :  { %s1595_s11 = smov 0   ;;  %s1597_s12 = smov 0  }
   0x6 LB: > { %s1612_s13 = sadd.s32 4294967295, %s1567_s12   ;;  %s1104_s14 = sadd.s32 4294967294, %s1567_s12   ;;  %s1567_s12 = sphi %s1597_s12, %s1924_s12   ;;  %s1563_s11 = sphi %s1595_s11, %s1923_s11   ;;  %s1559_s10 = sphi %s1593_s10, %s1922_s10   ;;  %s1555_s9 = sphi %s1591_s9, %s1921_s9  }
   0x7   : > { %p39_p0 = scmp.ne.s32.totalorder %s1559_s10, %s1555_s9  ;;  %p1905_p1 = scmp.eq.s32.totalorder %s1612_s13, 0 }
   0x8   : > { %p90_p3 = scmp.eq.s32.totalorder %s1104_s14, 1  ;;  %p1105_p5 = scmp.ge.s32.totalorder %s1567_s12, 1 }
   0x9   : > { %p1621_p4 = por %p1905_p1, %p39_p0  ;;  %p97_p7 = scmp.lt.s32.totalorder %s1567_s12, 3 }
   0xa   : > { %p1626_p6 = por %p90_p3, %p39_p0  ;;  %s1569_s18 = smov [#allocation5]  }
   0xb   : > { %s1908_s15 = scalar_select %p1621_p4, 1, 0 }
   0xc   : > { %s1909_s16 = scalar_select %p1626_p6, 1, 0 }
   0xd   : > { %p1631_p8 = pnand %p1105_p5, %p97_p7  ;;  %s109_s19 = sshll.u32 %s1569_s18, 4  ;;  %s1635_s19 = int_to_ptr.vmem [resolvable:$true] %s109_s19 }
   0xe   : > { %s1647_s21 = sadd.s32 1, %s1567_s12   ;;  %s26_s22 = sadd.s32 1, %s1563_s11 }
   0xf   : > { %s1910_s17 = scalar_select %p1631_p8, 1, 0 }
  0x10   : > { %p1386_p9 = pneg %p1631_p8  ;;  %s23_s23 = ssub.s32 %s1567_s12, %s1647_s21 }
  0x11   : > { %s1439_s26 = scalar_lea.hbm %s1903_s1, 2048 }
  0x12   : > { %p1642_p11 = pnand %p1386_p9, %p1905_p1  ;;  %p1440_p12 = scmp.ne.s32.totalorder %s1903_s1, %s1439_s26 }
  0x13   : > { %p1446_p5 = scmp.lt.u32.totalorder %s1439_s26, %s1903_s1 }
  0x14   : > { %p1441_p13 = pneg %p1642_p11 }
  0x16   : > { %p1442_p0 = pnand %p1441_p13, %p1440_p12 }
  0x18   : > { %p1443_p3 = pneg %p1442_p0 }
  0x1a   : > { %p1448_p7 = pnand %p1446_p5, %p1443_p3 }
  0x1c   : > { %1451 = shalt.err (!%p1448_p7)
}
  0x1d   : > { %s1452_s3 = scalar_lea.vmem %s1635_s19, 2048  ;;  %p1460_p2 = scmp.lt.s32.totalorder %s1635_s19, %s1635_s19 }
  0x1e   : > { %p1453_p9 = scmp.ne.s32.totalorder %s1635_s19, %s1452_s3  ;;  %p1461_p6 = scmp.lt.s32.totalorder %s1452_s3, %s1452_s3 }
  0x20   : > { %p1455_p10 = pnand %p1453_p9, %p1441_p13  ;;  %p1462_p4 = por %p1461_p6, %p1460_p2 }
  0x22   : > { %p1456_p1 = pneg %p1455_p10 }
  0x24   : > { %p1463_p8 = pnand %p1462_p4, %p1456_p1 }
  0x26   : > { %1466 = shalt.err (!%p1463_p8)
}
  0x27   : > { %s1570_s4 = smov 128   ;;  %s1571_s5 = smov 8  }
  0x28   : > { %1389 = dma.hbm_to_vmem [thread:$0]  (!%p1642_p11), %s1903_s1, 2048, %s1635_s19, [#allocation6], %s1570_s4, %s1570_s4, %s1571_s5  }
  0x29   : > { %p24_p1 = scmp.eq.s32.totalorder %s23_s23, 0  ;;  %p33_p2 = scmp.ne.s32.totalorder %s1563_s11, %s1559_s10 }
  0x2a   : > { %p34_p4 = scmp.eq.s32.totalorder %s1567_s12, 0  ;;  %p1399_p6 = scmp.lt.s32.totalorder %s1567_s12, 2 }
  0x2b   : > { %s1681_s8 = scalar_select %p24_p1, %s1563_s11, %s26_s22  }
  0x2c   : > { %p35_p8 = por %p34_p4, %p33_p2  ;;  %p1912_p10 = scmp.eq.s32.totalorder %s1612_s13, 1 }
  0x2d   : > { %s123_s18 = sand.u32 1, %s1563_s11   ;;  %s1120_s20 = sshll.u32 %s1567_s12, 13 }
  0x2e   : > { %p1685_p12 = por %p1912_p10, %p33_p2  ;;  %s1108_s24 = sshll.u32 %s123_s18, 9 }
  0x2f   : > { %s1694_s27 = scalar_lea.hbm %s1902_s0, %s1120_s20  ;;  %s127_s19 = scalar_lea.vmem [#allocation2], %s1108_s24 }
  0x30   : > { %s134_s22 = sshll.u32 %s127_s19, 4  ;;  %p1696_p11 = pnand %p1399_p6, %p35_p8  ;;  %s1700_s22 = int_to_ptr.vmem [resolvable:$true] %s134_s22 }
  0x31   : > { %s1702_s28 = scalar_lea.sflag [#allocation3], %s123_s18  ;;  %s1467_s29 = scalar_lea.hbm %s1694_s27, 8192 }
  0x32   : > { %p1468_p13 = scmp.ne.s32.totalorder %s1694_s27, %s1467_s29  ;;  %p1469_p0 = pneg %p1696_p11 }
  0x33   : > { %s1472_s6 = scalar_lea.hbm %s1902_s0, 16384  ;;  %p1473_p7 = scmp.lt.u32.totalorder %s1694_s27, %s1902_s0 }
  0x34   : > { %p1470_p3 = pnand %p1469_p0, %p1468_p13  ;;  %p1474_p9 = scmp.lt.u32.totalorder %s1472_s6, %s1467_s29 }
  0x35   : > { %p1476_p2 = scmp.lt.u32.totalorder %s1467_s29, %s1694_s27 }
  0x36   : > { %p1471_p5 = pneg %p1470_p3  ;;  %p1475_p1 = por %p1474_p9, %p1473_p7 }
  0x38   : > { %p1477_p4 = por %p1476_p2, %p1475_p1 }
  0x3a   : > { %p1478_p6 = pnand %p1477_p4, %p1471_p5 }
  0x3c   : > { %1481 = shalt.err (!%p1478_p6)
}
  0x3d   : > { %s1482_s18 = scalar_lea.vmem %s1700_s22, 8192  ;;  %s1572_s24 = smov [#allocation2]  }
  0x3e   : > { %p1483_p8 = scmp.ne.s32.totalorder %s1700_s22, %s1482_s18  ;;  %s1487_s25 = sshll.u32 %s1572_s24, 4  ;;  %s1488_s25 = int_to_ptr.vmem [resolvable:$false] %s1487_s25 }
  0x3f   : > { %s1489_s26 = scalar_lea.vmem %s1488_s25, 16384  ;;  %p1490_p3 = scmp.lt.s32.totalorder %s1700_s22, %s1488_s25 }
  0x40   : > { %p1485_p10 = pnand %p1483_p8, %p1469_p0  ;;  %p1491_p7 = scmp.lt.s32.totalorder %s1489_s26, %s1482_s18 }
  0x42   : > { %p1486_p13 = pneg %p1485_p10  ;;  %p1492_p9 = por %p1491_p7, %p1490_p3 }
  0x44   : > { %p1493_p1 = pnand %p1492_p9, %p1486_p13 }
  0x46   : > { %1496 = shalt.err (!%p1493_p1)
}
  0x47   : > { %1393 = dma.hbm_to_vmem [thread:$0]  (!%p1696_p11), %s1694_s27, 8192, %s1700_s22, %s1702_s28, %s1570_s4, %s1570_s4, %s1571_s5  }
  0x48   : > { %p1915_p0 = scmp.ne.s32.totalorder %s1910_s17, 0 }
  0x49   : > { %s1736_s19 = sand.u32 (!%p1915_p0), 1, %s1559_s10   ;;  %p1916_p5 = scmp.ne.s32.totalorder (!%p1915_p0), %s1908_s15, 0 }
  0x4a   : > { %146 = sbr.rel (%p1915_p0) target bundleno = 424 (0x1a8), region = 28  ;;  %s1112_s29 = sshll.u32 (!%p1915_p0), %s1736_s19, 9 }
  0x4b   : > { %s149_s30 = scalar_lea.sflag (!%p1915_p0), [#allocation3], %s1736_s19  ;;  %s1740_s3 = scalar_lea.vmem (!%p1915_p0), [#allocation2], %s1112_s29 }
  0x51   : > { %1542 = dma.done.wait (%p1916_p5), %s149_s30, 8192  }
  0x52   : > { %1544 = vsyncadd (%p1916_p5), %s149_s30, 4294959104  ;;  %p1917_p11 = scmp.eq.s32.totalorder %s1612_s13, 0 }
  0x54   : > { %1546 = dma.done.wait (%p1917_p11), [#allocation6], 2048   ;;  %p1918_p2 = pmov %p1917_p11 }
  0x55   : > { %v307_v0 = vld [vmem:[#allocation5] sm:$0xff]  ;;  %v308_v1 = vld [vmem:[#allocation5 + $0x8] sm:$0xff]  ;;  %v309_v2 = vld [vmem:[#allocation5 + $0x10] sm:$0xff]  ;;  %vm964_vm0 = vcmask 1041409   ;;  %vm966_vm1 = vcmask 1042434   ;;  %vm968_vm2 = vcmask 1043459  }
  0x56   : > { %1548 = vsyncadd (%p1918_p2), [#allocation6], 4294965248  ;;  %v1330_v3 = vpack.c.bf16 %v308_v1, %v307_v0  ;;  %v310_v4 = vld [vmem:[#allocation5 + $0x18] sm:$0xff]  ;;  %v311_v6 = vld [vmem:[#allocation5 + $0x20] sm:$0xff]  ;;  %vm970_vm3 = vcmask 1044484   ;;  %vm972_vm4 = vcmask 1045509  }
  0x57   : > { %v1334_v5 = vpack.c.bf16 %v310_v4, %v309_v2  ;;  %v312_v7 = vld [vmem:[#allocation5 + $0x28] sm:$0xff]  ;;  %v179_v9 = vld [vmem:[%s1740_s3] sm:$0xff]  ;;  %v313_v11 = vld [vmem:[#allocation5 + $0x30] sm:$0xff]  ;;  %vm974_vm5 = vcmask 1046534   ;;  %vm976_vm6 = vcmask 1047559   ;;  %s1114_s15 = sshll.u32 %s1736_s19, 5 }
  0x58   : > { %1331 = vmatprep.subr.bf16.mxu0 %v1330_v3  ;;  %1362 = vmatprep.subr.bf16.mxu1 %v1330_v3  ;;  %v1338_v8 = vpack.c.bf16 %v312_v7, %v311_v6  ;;  %v211_v10 = vld [vmem:[%s1740_s3 + $0x100] sm:$0xff]  ;;  %v314_v12 = vld [vmem:[#allocation5 + $0x38] sm:$0xff]  ;;  %v243_v13 = vmax.f32 %v179_v9, 0.0  ;;  %v316_v17 = vld [vmem:[#allocation5 + $0x48] sm:$0xff]  ;;  %s1831_s17 = scalar_lea.vmem [#allocation7], %s1114_s15  ;;  %s1121_s4 = sshll.u32 %s1612_s13, 9 }
  0x59   : > { %1333 = vmatpush3.bf16.msra.mxu0 %v1330_v3  ;;  %1370 = vmatpush3.bf16.msra.mxu1 %v1330_v3  ;;  %v275_v14 = vmax.f32 %v211_v10, 0.0  ;;  %v1342_v15 = vpack.c.bf16 %v314_v12, %v313_v11  ;;  %v315_v16 = vld [vmem:[#allocation5 + $0x40] sm:$0xff]  ;;  %v317_v19 = vld [vmem:[#allocation5 + $0x50] sm:$0xff]  ;;  %v318_v20 = vld [vmem:[#allocation5 + $0x58] sm:$0xff]  ;;  %s1021_s5 = sshll.u32 %s1831_s17, 4  ;;  %s1852_s23 = scalar_lea.hbm %s1904_s2, %s1121_s4  ;;  %s1854_s5 = int_to_ptr.vmem [resolvable:$true] %s1021_s5 }
  0x5a   : > { %1335 = vmatprep.subr.bf16.mxu0 %v1334_v5  ;;  %1363 = vmatprep.subr.bf16.mxu1 %v1334_v5  ;;  %v1346_v18 = vpack.c.bf16 %v316_v17, %v315_v16  ;;  %v1350_v21 = vpack.c.bf16 %v318_v20, %v317_v19  ;;  %v319_v22 = vld [vmem:[#allocation5 + $0x60] sm:$0xff]  ;;  %v320_v23 = vld [vmem:[#allocation5 + $0x68] sm:$0xff]  ;;  %v321_v25 = vld [vmem:[#allocation5 + $0x70] sm:$0xff]  ;;  %s1008_s13 = scalar_lea.sflag [#allocation4], %s1736_s19  ;;  %s1497_s28 = scalar_lea.vmem %s1854_s5, 512 }
  0x5b   : > { %1234 = vmatprep.mubr.f32.mxu0 %v243_v13  ;;  %1282 = vmatprep.mubr.f32.mxu1 %v275_v14  ;;  %v1354_v24 = vpack.c.bf16 %v320_v23, %v319_v22  ;;  %v322_v26 = vld [vmem:[#allocation5 + $0x78] sm:$0xff]  ;;  %v180_v28 = vld [vmem:[%s1740_s3 + $0x8] sm:$0xff]  ;;  %v181_v30 = vld [vmem:[%s1740_s3 + $0x10] sm:$0xff]  ;;  %p1498_p4 = scmp.ne.s32.totalorder %s1854_s5, %s1497_s28  ;;  %s1573_s6 = smov [#allocation7]  }
  0x5c   : > { %v1358_v27 = vpack.c.bf16 %v322_v26, %v321_v25  ;;  %v212_v29 = vld [vmem:[%s1740_s3 + $0x108] sm:$0xff]  ;;  %v213_v31 = vld [vmem:[%s1740_s3 + $0x110] sm:$0xff]  ;;  %v244_v32 = vmax.f32 %v180_v28, 0.0  ;;  %v245_v34 = vmax.f32 %v181_v30, 0.0  ;;  %v182_v36 = vld [vmem:[%s1740_s3 + $0x18] sm:$0xff]  ;;  %s1501_s7 = sshll.u32 %s1573_s6, 4  ;;  %s1502_s7 = int_to_ptr.vmem [resolvable:$false] %s1501_s7 }
  0x5d   : > { %1337 = vmatpush3.bf16.msra.mxu0 %v1334_v5  ;;  %1371 = vmatpush3.bf16.msra.mxu1 %v1334_v5  ;;  %v276_v33 = vmax.f32 %v212_v29, 0.0  ;;  %v277_v35 = vmax.f32 %v213_v31, 0.0  ;;  %v214_v37 = vld [vmem:[%s1740_s3 + $0x118] sm:$0xff]  ;;  %v183_v38 = vld [vmem:[%s1740_s3 + $0x20] sm:$0xff]  ;;  %v246_v40 = vmax.f32 %v182_v36, 0.0  ;;  %v184_v44 = vld [vmem:[%s1740_s3 + $0x28] sm:$0xff]  ;;  %p1499_p6 = pnand %p1498_p4, %p1685_p12  ;;  %p1504_p10 = scmp.lt.s32.totalorder %s1854_s5, %s1502_s7 }
  0x5e   : > { %1339 = vmatprep.subr.bf16.mxu0 %v1338_v8  ;;  %1364 = vmatprep.subr.bf16.mxu1 %v1338_v8  ;;  %v215_v39 = vld [vmem:[%s1740_s3 + $0x120] sm:$0xff]  ;;  %v278_v41 = vmax.f32 %v214_v37, 0.0  ;;  %v247_v42 = vmax.f32 %v183_v38, 0.0  ;;  %v216_v45 = vld [vmem:[%s1740_s3 + $0x128] sm:$0xff]  ;;  %v185_v46 = vld [vmem:[%s1740_s3 + $0x30] sm:$0xff]  ;;  %v248_v48 = vmax.f32 %v184_v44, 0.0 }
  0x5f   : > { %v279_v43 = vmax.f32 %v215_v39, 0.0  ;;  %v217_v47 = vld [vmem:[%s1740_s3 + $0x130] sm:$0xff]  ;;  %v280_v49 = vmax.f32 %v216_v45, 0.0  ;;  %v249_v50 = vmax.f32 %v185_v46, 0.0  ;;  %v186_v52 = vld [vmem:[%s1740_s3 + $0x38] sm:$0xff]  ;;  %v187_v54 = vld [vmem:[%s1740_s3 + $0x40] sm:$0xff]  ;;  %p1500_p8 = pneg %p1499_p6 }
  0x60   : > { %v281_v51 = vmax.f32 %v217_v47, 0.0  ;;  %v218_v53 = vld [vmem:[%s1740_s3 + $0x138] sm:$0xff]  ;;  %v219_v55 = vld [vmem:[%s1740_s3 + $0x140] sm:$0xff]  ;;  %v250_v56 = vmax.f32 %v186_v52, 0.0  ;;  %v251_v58 = vmax.f32 %v187_v54, 0.0  ;;  %v188_v60 = vld [vmem:[%s1740_s3 + $0x48] sm:$0xff] }
  0x61   : > { %1341 = vmatpush3.bf16.msra.mxu0 %v1338_v8  ;;  %1372 = vmatpush3.bf16.msra.mxu1 %v1338_v8  ;;  %v282_v57 = vmax.f32 %v218_v53, 0.0  ;;  %v283_v59 = vmax.f32 %v219_v55, 0.0  ;;  %v220_v61 = vld [vmem:[%s1740_s3 + $0x148] sm:$0xff]  ;;  %v189_v62 = vld [vmem:[%s1740_s3 + $0x50] sm:$0xff]  ;;  %v252_v0 = vmax.f32 %v188_v60, 0.0  ;;  %v190_v4 = vld [vmem:[%s1740_s3 + $0x58] sm:$0xff] }
  0x62   : > { %1343 = vmatprep.subr.bf16.mxu0 %v1342_v15  ;;  %1365 = vmatprep.subr.bf16.mxu1 %v1342_v15  ;;  %v221_v63 = vld [vmem:[%s1740_s3 + $0x150] sm:$0xff]  ;;  %v284_v1 = vmax.f32 %v220_v61, 0.0  ;;  %v253_v2 = vmax.f32 %v189_v62, 0.0  ;;  %v222_v5 = vld [vmem:[%s1740_s3 + $0x158] sm:$0xff]  ;;  %v191_v6 = vld [vmem:[%s1740_s3 + $0x60] sm:$0xff]  ;;  %v254_v8 = vmax.f32 %v190_v4, 0.0 }
  0x63   : > { %v285_v3 = vmax.f32 %v221_v63, 0.0  ;;  %v223_v7 = vld [vmem:[%s1740_s3 + $0x160] sm:$0xff]  ;;  %v286_v9 = vmax.f32 %v222_v5, 0.0  ;;  %v255_v10 = vmax.f32 %v191_v6, 0.0  ;;  %v192_v12 = vld [vmem:[%s1740_s3 + $0x68] sm:$0xff]  ;;  %v193_v14 = vld [vmem:[%s1740_s3 + $0x70] sm:$0xff] }
  0x64   : > { %v287_v11 = vmax.f32 %v223_v7, 0.0  ;;  %v224_v13 = vld [vmem:[%s1740_s3 + $0x168] sm:$0xff]  ;;  %v256_v16 = vmax.f32 %v192_v12, 0.0  ;;  %v194_v20 = vld [vmem:[%s1740_s3 + $0x78] sm:$0xff]  ;;  %v195_v22 = vld [vmem:[%s1740_s3 + $0x80] sm:$0xff]  ;;  %s1503_s20 = scalar_lea.vmem %s1502_s7, 1024 }
  0x65   : > { %1345 = vmatpush3.bf16.msra.mxu0 %v1342_v15  ;;  %1373 = vmatpush3.bf16.msra.mxu1 %v1342_v15  ;;  %v225_v15 = vld [vmem:[%s1740_s3 + $0x170] sm:$0xff]  ;;  %v288_v17 = vmax.f32 %v224_v13, 0.0  ;;  %v227_v23 = vld [vmem:[%s1740_s3 + $0x180] sm:$0xff]  ;;  %v259_v26 = vmax.f32 %v195_v22, 0.0  ;;  %v196_v28 = vld [vmem:[%s1740_s3 + $0x88] sm:$0xff]  ;;  %p1505_p13 = scmp.lt.s32.totalorder %s1503_s20, %s1497_s28 }
  0x66   : > { %1347 = vmatprep.subr.bf16.mxu0 %v1346_v18  ;;  %1366 = vmatprep.subr.bf16.mxu1 %v1346_v18  ;;  %v289_v19 = vmax.f32 %v225_v15, 0.0  ;;  %v228_v29 = vld [vmem:[%s1740_s3 + $0x188] sm:$0xff]  ;;  %v197_v30 = vld [vmem:[%s1740_s3 + $0x90] sm:$0xff]  ;;  %v198_v36 = vld [vmem:[%s1740_s3 + $0x98] sm:$0xff] }
  0x67   : > { %v229_v31 = vld [vmem:[%s1740_s3 + $0x190] sm:$0xff]  ;;  %v230_v37 = vld [vmem:[%s1740_s3 + $0x198] sm:$0xff]  ;;  %v199_v38 = vld [vmem:[%s1740_s3 + $0xa0] sm:$0xff]  ;;  %p1506_p3 = por %p1505_p13, %p1504_p10 }
  0x68   : > { %v231_v39 = vld [vmem:[%s1740_s3 + $0x1a0] sm:$0xff]  ;;  %v200_v44 = vld [vmem:[%s1740_s3 + $0xa8] sm:$0xff]  ;;  %v201_v46 = vld [vmem:[%s1740_s3 + $0xb0] sm:$0xff] }
  0x69   : > { %1349 = vmatpush3.bf16.msra.mxu0 %v1346_v18  ;;  %1374 = vmatpush3.bf16.msra.mxu1 %v1346_v18  ;;  %v257_v18 = vmax.f32 %v193_v14, 0.0  ;;  %v232_v45 = vld [vmem:[%s1740_s3 + $0x1a8] sm:$0xff]  ;;  %v233_v47 = vld [vmem:[%s1740_s3 + $0x1b0] sm:$0xff]  ;;  %v202_v52 = vld [vmem:[%s1740_s3 + $0xb8] sm:$0xff]  ;;  %p1507_p7 = pnand %p1506_p3, %p1500_p8 }
  0x6a   : > { %1351 = vmatprep.subr.bf16.mxu0 %v1350_v21  ;;  %1367 = vmatprep.subr.bf16.mxu1 %v1350_v21  ;;  %v234_v53 = vld [vmem:[%s1740_s3 + $0x1b8] sm:$0xff]  ;;  %v203_v54 = vld [vmem:[%s1740_s3 + $0xc0] sm:$0xff]  ;;  %v204_v60 = vld [vmem:[%s1740_s3 + $0xc8] sm:$0xff] }
  0x6b   : > { %v235_v55 = vld [vmem:[%s1740_s3 + $0x1c0] sm:$0xff]  ;;  %v236_v61 = vld [vmem:[%s1740_s3 + $0x1c8] sm:$0xff]  ;;  %v205_v62 = vld [vmem:[%s1740_s3 + $0xd0] sm:$0xff] }
  0x6c   : > { %v237_v63 = vld [vmem:[%s1740_s3 + $0x1d0] sm:$0xff]  ;;  %v206_v4 = vld [vmem:[%s1740_s3 + $0xd8] sm:$0xff]  ;;  %v207_v6 = vld [vmem:[%s1740_s3 + $0xe0] sm:$0xff] }
  0x6d   : > { %1353 = vmatpush3.bf16.msra.mxu0 %v1350_v21  ;;  %1375 = vmatpush3.bf16.msra.mxu1 %v1350_v21  ;;  %v226_v21 = vld [vmem:[%s1740_s3 + $0x178] sm:$0xff]  ;;  %v239_v7 = vld [vmem:[%s1740_s3 + $0x1e0] sm:$0xff]  ;;  %v208_v12 = vld [vmem:[%s1740_s3 + $0xe8] sm:$0xff] }
  0x6e   : > { %1355 = vmatprep.subr.bf16.mxu0 %v1354_v24  ;;  %1368 = vmatprep.subr.bf16.mxu1 %v1354_v24  ;;  %v290_v25 = vmax.f32 %v226_v21, 0.0  ;;  %v238_v5 = vld [vmem:[%s1740_s3 + $0x1d8] sm:$0xff]  ;;  %v240_v13 = vld [vmem:[%s1740_s3 + $0x1e8] sm:$0xff]  ;;  %v209_v14 = vld [vmem:[%s1740_s3 + $0xf0] sm:$0xff] }
  0x6f   : > { %v241_v15 = vld [vmem:[%s1740_s3 + $0x1f0] sm:$0xff]  ;;  %v242_v21 = vld [vmem:[%s1740_s3 + $0x1f8] sm:$0xff] }
  0x71   : > { %1357 = vmatpush3.bf16.msra.mxu0 %v1354_v24  ;;  %1376 = vmatpush3.bf16.msra.mxu1 %v1354_v24  ;;  %v258_v24 = vmax.f32 %v194_v20, 0.0  ;;  %v210_v20 = vld [vmem:[%s1740_s3 + $0xf8] sm:$0xff] }
  0x72   : > { %1359 = vmatprep.subr.bf16.mxu0 %v1358_v27  ;;  %1369 = vmatprep.subr.bf16.mxu1 %v1358_v27  ;;  %v274_v22 = vmax.f32 %v210_v20, 0.0 }
  0x75   : > { %1361 = vmatpush3.bf16.msra.mxu0 %v1358_v27  ;;  %1377 = vmatpush3.bf16.msra.mxu1 %v1358_v27  ;;  %v291_v27 = vmax.f32 %v227_v23, 0.0  ;;  %v306_v23 = vmax.f32 %v242_v21, 0.0 }
  0x78   : > { %1235 = vmatmul.mubr.f32.vlgmr.msra.gmra.mrb[0].mxu0 %v244_v32  ;;  %1283 = vmatmul.mubr.f32.vlgmr.msra.gmra.mrb[0].mxu1 %v276_v33  ;;  %v260_v32 = vmax.f32 %v196_v28, 0.0  ;;  %v292_v33 = vmax.f32 %v228_v29, 0.0 }
  0x79   : > { %1237 = vmatprep.mubr.f32.mxu0 %v245_v34  ;;  %1285 = vmatprep.mubr.f32.mxu1 %v277_v35  ;;  %v261_v34 = vmax.f32 %v197_v30, 0.0  ;;  %v293_v35 = vmax.f32 %v229_v31, 0.0 }
  0x7c   : > { %1238 = vmatmul.mubr.f32.gmra.mrb[2].mxu0 %v246_v40  ;;  %1286 = vmatmul.mubr.f32.gmra.mrb[2].mxu1 %v278_v41  ;;  %v262_v40 = vmax.f32 %v198_v36, 0.0  ;;  %v294_v41 = vmax.f32 %v230_v37, 0.0 }
  0x7d   : > { %1240 = vmatprep.mubr.f32.mxu0 %v247_v42  ;;  %1288 = vmatprep.mubr.f32.mxu1 %v279_v43  ;;  %v263_v42 = vmax.f32 %v199_v38, 0.0  ;;  %v295_v43 = vmax.f32 %v231_v39, 0.0 }
  0x80   : > { %1241 = vmatmul.mubr.f32.gmra.mrb[4].mxu0 %v248_v48  ;;  %1289 = vmatmul.mubr.f32.gmra.mrb[4].mxu1 %v280_v49  ;;  %v264_v48 = vmax.f32 %v200_v44, 0.0  ;;  %v296_v49 = vmax.f32 %v232_v45, 0.0 }
  0x81   : > { %1243 = vmatprep.mubr.f32.mxu0 %v249_v50  ;;  %1291 = vmatprep.mubr.f32.mxu1 %v281_v51  ;;  %v265_v50 = vmax.f32 %v201_v46, 0.0  ;;  %v297_v51 = vmax.f32 %v233_v47, 0.0 }
  0x84   : > { %1244 = vmatmul.mubr.f32.gmra.mrb[6].mxu0 %v250_v56  ;;  %1292 = vmatmul.mubr.f32.gmra.mrb[6].mxu1 %v282_v57  ;;  %v266_v56 = vmax.f32 %v202_v52, 0.0  ;;  %v298_v57 = vmax.f32 %v234_v53, 0.0 }
  0x85   : > { %1246 = vmatprep.mubr.f32.mxu0 %v251_v58  ;;  %1294 = vmatprep.mubr.f32.mxu1 %v283_v59  ;;  %v267_v58 = vmax.f32 %v203_v54, 0.0  ;;  %v299_v59 = vmax.f32 %v235_v55, 0.0 }
  0x88   : > { %1247 = vmatmul.mubr.f32.gmra.mrb[8].mxu0 %v252_v0  ;;  %1295 = vmatmul.mubr.f32.gmra.mrb[8].mxu1 %v284_v1  ;;  %v268_v0 = vmax.f32 %v204_v60, 0.0  ;;  %v300_v1 = vmax.f32 %v236_v61, 0.0 }
  0x89   : > { %1249 = vmatprep.mubr.f32.mxu0 %v253_v2  ;;  %1297 = vmatprep.mubr.f32.mxu1 %v285_v3  ;;  %v269_v2 = vmax.f32 %v205_v62, 0.0  ;;  %v301_v3 = vmax.f32 %v237_v63, 0.0 }
  0x8c   : > { %1250 = vmatmul.mubr.f32.gmra.mrb[10].mxu0 %v254_v8  ;;  %1298 = vmatmul.mubr.f32.gmra.mrb[10].mxu1 %v286_v9  ;;  %v270_v8 = vmax.f32 %v206_v4, 0.0  ;;  %v302_v9 = vmax.f32 %v238_v5, 0.0 }
  0x8d   : > { %1252 = vmatprep.mubr.f32.mxu0 %v255_v10  ;;  %1300 = vmatprep.mubr.f32.mxu1 %v287_v11  ;;  %v271_v10 = vmax.f32 %v207_v6, 0.0  ;;  %v303_v11 = vmax.f32 %v239_v7, 0.0 }
  0x90   : > { %1253 = vmatmul.mubr.f32.gmra.mrb[12].mxu0 %v256_v16  ;;  %1301 = vmatmul.mubr.f32.gmra.mrb[12].mxu1 %v288_v17  ;;  %v272_v16 = vmax.f32 %v208_v12, 0.0  ;;  %v304_v17 = vmax.f32 %v240_v13, 0.0 }
  0x91   : > { %1255 = vmatprep.mubr.f32.mxu0 %v257_v18  ;;  %1303 = vmatprep.mubr.f32.mxu1 %v289_v19  ;;  %v273_v18 = vmax.f32 %v209_v14, 0.0  ;;  %v305_v19 = vmax.f32 %v241_v15, 0.0 }
  0x94   : > { %1256 = vmatmul.mubr.f32.gmra.mrb[14].mxu0 %v258_v24  ;;  %1304 = vmatmul.mubr.f32.gmra.mrb[14].mxu1 %v290_v25 }
  0x95   : > { %1258 = vmatprep.mubr.f32.mxu0 %v259_v26  ;;  %1306 = vmatprep.mubr.f32.mxu1 %v291_v27 }
  0x98   : > { %1259 = vmatmul.mubr.f32.gmra.mrb[16].mxu0 %v260_v32  ;;  %1307 = vmatmul.mubr.f32.gmra.mrb[16].mxu1 %v292_v33 }
  0x99   : > { %1261 = vmatprep.mubr.f32.mxu0 %v261_v34  ;;  %1309 = vmatprep.mubr.f32.mxu1 %v293_v35 }
  0x9c   : > { %1262 = vmatmul.mubr.f32.gmra.mrb[18].mxu0 %v262_v40  ;;  %1310 = vmatmul.mubr.f32.gmra.mrb[18].mxu1 %v294_v41 }
  0x9d   : > { %1264 = vmatprep.mubr.f32.mxu0 %v263_v42  ;;  %1312 = vmatprep.mubr.f32.mxu1 %v295_v43 }
  0xa0   : > { %1265 = vmatmul.mubr.f32.gmra.mrb[20].mxu0 %v264_v48  ;;  %1313 = vmatmul.mubr.f32.gmra.mrb[20].mxu1 %v296_v49 }
  0xa1   : > { %1267 = vmatprep.mubr.f32.mxu0 %v265_v50  ;;  %1315 = vmatprep.mubr.f32.mxu1 %v297_v51 }
  0xa4   : > { %1268 = vmatmul.mubr.f32.gmra.mrb[22].mxu0 %v266_v56  ;;  %1316 = vmatmul.mubr.f32.gmra.mrb[22].mxu1 %v298_v57 }
  0xa5   : > { %1270 = vmatprep.mubr.f32.mxu0 %v267_v58  ;;  %1318 = vmatprep.mubr.f32.mxu1 %v299_v59 }
  0xa8   : > { %1271 = vmatmul.mubr.f32.gmra.mrb[24].mxu0 %v268_v0  ;;  %1319 = vmatmul.mubr.f32.gmra.mrb[24].mxu1 %v300_v1 }
  0xa9   : > { %1273 = vmatprep.mubr.f32.mxu0 %v269_v2  ;;  %1321 = vmatprep.mubr.f32.mxu1 %v301_v3 }
  0xac   : > { %1274 = vmatmul.mubr.f32.gmra.mrb[26].mxu0 %v270_v8  ;;  %1322 = vmatmul.mubr.f32.gmra.mrb[26].mxu1 %v302_v9 }
  0xad   : > { %1276 = vmatprep.mubr.f32.mxu0 %v271_v10  ;;  %1324 = vmatprep.mubr.f32.mxu1 %v303_v11 }
  0xb0   : > { %1277 = vmatmul.mubr.f32.gmra.mrb[28].mxu0 %v272_v16  ;;  %1325 = vmatmul.mubr.f32.gmra.mrb[28].mxu1 %v304_v17 }
  0xb1   : > { %1279 = vmatprep.mubr.f32.mxu0 %v273_v18  ;;  %1327 = vmatprep.mubr.f32.mxu1 %v305_v19 }
  0xb4   : > { %1280 = vmatmul.mubr.f32.gmra.mrb[30].mxu0 %v274_v22  ;;  %1328 = vmatmul.mubr.f32.gmra.mrb[30].mxu1 %v306_v23 }
 0x14b   : > { %v1236_v24 = vpop.f32.mrb[0].mxu0  ;;  %v1284_v25 = vpop.f32.mrb[0].mxu1 }
 0x14c   : > { %v389_v26 = vpop.f32.mrb[1].mxu0  ;;  %v549_v27 = vpop.f32.mrb[1].mxu1 }
 0x14d   : > { %v708_v28 = vmax.f32 %v389_v26, %v1236_v24  ;;  %v820_v29 = vmax.f32 %v549_v27, %v1284_v25 }
 0x14f   : > { %v709_v30 = vrot.slane %v708_v28, 4  ;;  %v821_v31 = vrot.slane %v820_v29, 4  ;;  %v1239_v32 = vpop.f32.mrb[2].mxu0  ;;  %v1287_v33 = vpop.f32.mrb[2].mxu1 }
 0x150   : > { %v399_v34 = vpop.f32.mrb[3].mxu0  ;;  %v559_v35 = vpop.f32.mrb[3].mxu1 }
 0x151   : > { %v710_v36 = vmax.f32 %v708_v28, %v709_v30  ;;  %v822_v37 = vmax.f32 %v820_v29, %v821_v31  ;;  %v715_v38 = vmax.f32 %v399_v34, %v1239_v32  ;;  %v827_v39 = vmax.f32 %v559_v35, %v1287_v33 }
 0x153   : > { %v711_v40 = vrot.slane %v710_v36, 2  ;;  %v823_v41 = vrot.slane %v822_v37, 2  ;;  %v716_v42 = vrot.slane %v715_v38, 4  ;;  %v828_v43 = vrot.slane %v827_v39, 4  ;;  %v1242_v44 = vpop.f32.mrb[4].mxu0  ;;  %v1290_v45 = vpop.f32.mrb[4].mxu1 }
 0x154   : > { %v409_v46 = vpop.f32.mrb[5].mxu0  ;;  %v569_v47 = vpop.f32.mrb[5].mxu1 }
 0x155   : > { %v712_v48 = vmax.f32 %v710_v36, %v711_v40  ;;  %v824_v49 = vmax.f32 %v822_v37, %v823_v41  ;;  %v717_v50 = vmax.f32 %v715_v38, %v716_v42  ;;  %v829_v51 = vmax.f32 %v827_v39, %v828_v43 }
 0x156   : > { %v722_v52 = vmax.f32 %v409_v46, %v1242_v44  ;;  %v834_v53 = vmax.f32 %v569_v47, %v1290_v45 }
 0x157   : > { %v713_v54 = vrot.slane %v712_v48, 1  ;;  %v825_v55 = vrot.slane %v824_v49, 1  ;;  %v718_v56 = vrot.slane %v717_v50, 2  ;;  %v830_v57 = vrot.slane %v829_v51, 2  ;;  %v1245_v58 = vpop.f32.mrb[6].mxu0  ;;  %v1293_v59 = vpop.f32.mrb[6].mxu1 }
 0x158   : > { %v723_v60 = vrot.slane %v722_v52, 4  ;;  %v835_v61 = vrot.slane %v834_v53, 4  ;;  %v419_v62 = vpop.f32.mrb[7].mxu0  ;;  %v579_v63 = vpop.f32.mrb[7].mxu1 }
 0x159   : > { %v719_v0 = vmax.f32 %v717_v50, %v718_v56  ;;  %v831_v1 = vmax.f32 %v829_v51, %v830_v57  ;;  %v729_v4 = vmax.f32 %v419_v62, %v1245_v58  ;;  %v841_v5 = vmax.f32 %v579_v63, %v1293_v59 }
 0x15a   : > { %v724_v2 = vmax.f32 %v722_v52, %v723_v60  ;;  %v836_v3 = vmax.f32 %v834_v53, %v835_v61  ;;  %v714_v6 = vmax.f32 %v712_v48, %v713_v54  ;;  %v826_v7 = vmax.f32 %v824_v49, %v825_v55 }
 0x15b   : > { %v720_v8 = vrot.slane %v719_v0, 1  ;;  %v832_v9 = vrot.slane %v831_v1, 1  ;;  %v1248_v10 = vpop.f32.mrb[8].mxu0  ;;  %v1296_v11 = vpop.f32.mrb[8].mxu1  ;;  %v730_v14 = vrot.slane %v729_v4, 4  ;;  %v842_v15 = vrot.slane %v841_v5, 4 }
 0x15c   : > { %v725_v12 = vrot.slane %v724_v2, 2  ;;  %v837_v13 = vrot.slane %v836_v3, 2  ;;  %v429_v16 = vpop.f32.mrb[9].mxu0  ;;  %v589_v17 = vpop.f32.mrb[9].mxu1 }
 0x15d   : > { %v721_v18 = vmax.f32 %v719_v0, %v720_v8  ;;  %v833_v19 = vmax.f32 %v831_v1, %v832_v9  ;;  %v736_v20 = vmax.f32 %v429_v16, %v1248_v10  ;;  %v848_v21 = vmax.f32 %v589_v17, %v1296_v11 }
 0x15e   : > { %v726_v22 = vmax.f32 %v724_v2, %v725_v12  ;;  %v838_v23 = vmax.f32 %v836_v3, %v837_v13  ;;  %v731_v24 = vmax.f32 %v729_v4, %v730_v14  ;;  %v843_v25 = vmax.f32 %v841_v5, %v842_v15 }
 0x15f   : > { %v965_v26 = vsel %vm964_vm0, %v721_v18, %v714_v6  ;;  %v985_v27 = vsel %vm964_vm0, %v833_v19, %v826_v7  ;;  %v737_v28 = vrot.slane %v736_v20, 4  ;;  %v849_v29 = vrot.slane %v848_v21, 4  ;;  %v1251_v30 = vpop.f32.mrb[10].mxu0  ;;  %v1299_v31 = vpop.f32.mrb[10].mxu1 }
 0x160   : > { %v727_v32 = vrot.slane %v726_v22, 1  ;;  %v839_v33 = vrot.slane %v838_v23, 1  ;;  %v732_v34 = vrot.slane %v731_v24, 2  ;;  %v844_v35 = vrot.slane %v843_v25, 2  ;;  %v439_v36 = vpop.f32.mrb[11].mxu0  ;;  %v599_v37 = vpop.f32.mrb[11].mxu1 }
 0x161   : > { %v738_v38 = vmax.f32 %v736_v20, %v737_v28  ;;  %v850_v39 = vmax.f32 %v848_v21, %v849_v29  ;;  %v743_v40 = vmax.f32 %v439_v36, %v1251_v30  ;;  %v855_v41 = vmax.f32 %v599_v37, %v1299_v31 }
 0x162   : > { %v728_v42 = vmax.f32 %v726_v22, %v727_v32  ;;  %v840_v43 = vmax.f32 %v838_v23, %v839_v33  ;;  %v733_v44 = vmax.f32 %v731_v24, %v732_v34  ;;  %v845_v45 = vmax.f32 %v843_v25, %v844_v35 }
 0x163   : > { %v739_v46 = vrot.slane %v738_v38, 2  ;;  %v851_v47 = vrot.slane %v850_v39, 2  ;;  %v744_v48 = vrot.slane %v743_v40, 4  ;;  %v856_v49 = vrot.slane %v855_v41, 4  ;;  %v1254_v50 = vpop.f32.mrb[12].mxu0  ;;  %v1302_v51 = vpop.f32.mrb[12].mxu1 }
 0x164   : > { %v967_v52 = vsel %vm966_vm1, %v728_v42, %v965_v26  ;;  %v986_v53 = vsel %vm966_vm1, %v840_v43, %v985_v27  ;;  %v734_v54 = vrot.slane %v733_v44, 1  ;;  %v846_v55 = vrot.slane %v845_v45, 1  ;;  %v449_v56 = vpop.f32.mrb[13].mxu0  ;;  %v609_v57 = vpop.f32.mrb[13].mxu1 }
 0x165   : > { %v740_v58 = vmax.f32 %v738_v38, %v739_v46  ;;  %v852_v59 = vmax.f32 %v850_v39, %v851_v47  ;;  %v745_v60 = vmax.f32 %v743_v40, %v744_v48  ;;  %v857_v61 = vmax.f32 %v855_v41, %v856_v49 }
 0x166   : > { %v735_v62 = vmax.f32 %v733_v44, %v734_v54  ;;  %v847_v63 = vmax.f32 %v845_v45, %v846_v55  ;;  %v750_v0 = vmax.f32 %v449_v56, %v1254_v50  ;;  %v862_v1 = vmax.f32 %v609_v57, %v1302_v51 }
 0x167   : > { %v741_v2 = vrot.slane %v740_v58, 1  ;;  %v853_v3 = vrot.slane %v852_v59, 1  ;;  %v746_v4 = vrot.slane %v745_v60, 2  ;;  %v858_v5 = vrot.slane %v857_v61, 2  ;;  %v1257_v6 = vpop.f32.mrb[14].mxu0  ;;  %v1305_v7 = vpop.f32.mrb[14].mxu1 }
 0x168   : > { %v969_v8 = vsel %vm968_vm2, %v735_v62, %v967_v52  ;;  %v987_v9 = vsel %vm968_vm2, %v847_v63, %v986_v53  ;;  %v751_v10 = vrot.slane %v750_v0, 4  ;;  %v863_v11 = vrot.slane %v862_v1, 4  ;;  %v459_v12 = vpop.f32.mrb[15].mxu0  ;;  %v619_v13 = vpop.f32.mrb[15].mxu1 }
 0x169   : > { %v742_v14 = vmax.f32 %v740_v58, %v741_v2  ;;  %v854_v15 = vmax.f32 %v852_v59, %v853_v3  ;;  %v747_v16 = vmax.f32 %v745_v60, %v746_v4  ;;  %v859_v17 = vmax.f32 %v857_v61, %v858_v5 }
 0x16a   : > { %v752_v18 = vmax.f32 %v750_v0, %v751_v10  ;;  %v864_v19 = vmax.f32 %v862_v1, %v863_v11  ;;  %v757_v20 = vmax.f32 %v459_v12, %v1257_v6  ;;  %v869_v21 = vmax.f32 %v619_v13, %v1305_v7 }
 0x16b   : > { %v971_v22 = vsel %vm970_vm3, %v742_v14, %v969_v8  ;;  %v988_v23 = vsel %vm970_vm3, %v854_v15, %v987_v9  ;;  %v748_v24 = vrot.slane %v747_v16, 1  ;;  %v860_v25 = vrot.slane %v859_v17, 1  ;;  %v1260_v26 = vpop.f32.mrb[16].mxu0  ;;  %v1308_v27 = vpop.f32.mrb[16].mxu1 }
 0x16c   : > { %v753_v28 = vrot.slane %v752_v18, 2  ;;  %v865_v29 = vrot.slane %v864_v19, 2  ;;  %v758_v30 = vrot.slane %v757_v20, 4  ;;  %v870_v31 = vrot.slane %v869_v21, 4  ;;  %v469_v32 = vpop.f32.mrb[17].mxu0  ;;  %v629_v33 = vpop.f32.mrb[17].mxu1 }
 0x16d   : > { %v749_v34 = vmax.f32 %v747_v16, %v748_v24  ;;  %v861_v35 = vmax.f32 %v859_v17, %v860_v25  ;;  %v764_v36 = vmax.f32 %v469_v32, %v1260_v26  ;;  %v876_v37 = vmax.f32 %v629_v33, %v1308_v27 }
 0x16e   : > { %v754_v38 = vmax.f32 %v752_v18, %v753_v28  ;;  %v866_v39 = vmax.f32 %v864_v19, %v865_v29  ;;  %v759_v40 = vmax.f32 %v757_v20, %v758_v30  ;;  %v871_v41 = vmax.f32 %v869_v21, %v870_v31 }
 0x16f   : > { %v973_v42 = vsel %vm972_vm4, %v749_v34, %v971_v22  ;;  %v989_v43 = vsel %vm972_vm4, %v861_v35, %v988_v23  ;;  %v765_v44 = vrot.slane %v764_v36, 4  ;;  %v877_v45 = vrot.slane %v876_v37, 4  ;;  %v1263_v46 = vpop.f32.mrb[18].mxu0  ;;  %v1311_v47 = vpop.f32.mrb[18].mxu1 }
 0x170   : > { %v755_v48 = vrot.slane %v754_v38, 1  ;;  %v867_v49 = vrot.slane %v866_v39, 1  ;;  %v760_v50 = vrot.slane %v759_v40, 2  ;;  %v872_v51 = vrot.slane %v871_v41, 2  ;;  %v479_v52 = vpop.f32.mrb[19].mxu0  ;;  %v639_v53 = vpop.f32.mrb[19].mxu1 }
 0x171   : > { %v766_v54 = vmax.f32 %v764_v36, %v765_v44  ;;  %v878_v55 = vmax.f32 %v876_v37, %v877_v45  ;;  %v771_v56 = vmax.f32 %v479_v52, %v1263_v46  ;;  %v883_v57 = vmax.f32 %v639_v53, %v1311_v47 }
 0x172   : > { %v756_v58 = vmax.f32 %v754_v38, %v755_v48  ;;  %v868_v59 = vmax.f32 %v866_v39, %v867_v49  ;;  %v761_v60 = vmax.f32 %v759_v40, %v760_v50  ;;  %v873_v61 = vmax.f32 %v871_v41, %v872_v51 }
 0x173   : > { %v767_v62 = vrot.slane %v766_v54, 2  ;;  %v879_v63 = vrot.slane %v878_v55, 2  ;;  %v772_v0 = vrot.slane %v771_v56, 4  ;;  %v884_v1 = vrot.slane %v883_v57, 4  ;;  %v1266_v2 = vpop.f32.mrb[20].mxu0  ;;  %v1314_v3 = vpop.f32.mrb[20].mxu1 }
 0x174   : > { %v975_v4 = vsel %vm974_vm5, %v756_v58, %v973_v42  ;;  %v990_v5 = vsel %vm974_vm5, %v868_v59, %v989_v43  ;;  %v762_v6 = vrot.slane %v761_v60, 1  ;;  %v874_v7 = vrot.slane %v873_v61, 1  ;;  %v489_v8 = vpop.f32.mrb[21].mxu0  ;;  %v649_v9 = vpop.f32.mrb[21].mxu1 }
 0x175   : > { %v768_v10 = vmax.f32 %v766_v54, %v767_v62  ;;  %v880_v11 = vmax.f32 %v878_v55, %v879_v63  ;;  %v773_v12 = vmax.f32 %v771_v56, %v772_v0  ;;  %v885_v13 = vmax.f32 %v883_v57, %v884_v1 }
 0x176   : > { %v763_v14 = vmax.f32 %v761_v60, %v762_v6  ;;  %v875_v15 = vmax.f32 %v873_v61, %v874_v7  ;;  %v778_v16 = vmax.f32 %v489_v8, %v1266_v2  ;;  %v890_v17 = vmax.f32 %v649_v9, %v1314_v3 }
 0x177   : > { %v769_v18 = vrot.slane %v768_v10, 1  ;;  %v881_v19 = vrot.slane %v880_v11, 1  ;;  %v774_v20 = vrot.slane %v773_v12, 2  ;;  %v886_v21 = vrot.slane %v885_v13, 2  ;;  %v1269_v22 = vpop.f32.mrb[22].mxu0  ;;  %v1317_v23 = vpop.f32.mrb[22].mxu1 }
 0x178   : > { %v977_v24 = vsel %vm976_vm6, %v763_v14, %v975_v4  ;;  %v991_v25 = vsel %vm976_vm6, %v875_v15, %v990_v5  ;;  %v779_v26 = vrot.slane %v778_v16, 4  ;;  %v891_v27 = vrot.slane %v890_v17, 4  ;;  %v499_v28 = vpop.f32.mrb[23].mxu0  ;;  %v659_v29 = vpop.f32.mrb[23].mxu1 }
 0x179   : > { %1003 = vst [vmem:[%s1831_s17] sm:$0xff] %v977_v24  ;;  %1005 = vst [vmem:[%s1831_s17 + $0x10] sm:$0xff] %v991_v25  ;;  %v775_v30 = vmax.f32 %v773_v12, %v774_v20  ;;  %v887_v31 = vmax.f32 %v885_v13, %v886_v21  ;;  %v785_v34 = vmax.f32 %v499_v28, %v1269_v22 }
 0x17a   : > { %v780_v32 = vmax.f32 %v778_v16, %v779_v26  ;;  %v892_v33 = vmax.f32 %v890_v17, %v891_v27  ;;  %v897_v35 = vmax.f32 %v659_v29, %v1317_v23  ;;  %v770_v36 = vmax.f32 %v768_v10, %v769_v18 }
 0x17b   : > { %v882_v37 = vmax.f32 %v880_v11, %v881_v19  ;;  %v776_v38 = vrot.slane %v775_v30, 1  ;;  %v888_v39 = vrot.slane %v887_v31, 1  ;;  %v1272_v40 = vpop.f32.mrb[24].mxu0  ;;  %v1320_v41 = vpop.f32.mrb[24].mxu1  ;;  %v786_v44 = vrot.slane %v785_v34, 4 }
 0x17c   : > { %v781_v42 = vrot.slane %v780_v32, 2  ;;  %v893_v43 = vrot.slane %v892_v33, 2  ;;  %v898_v45 = vrot.slane %v897_v35, 4  ;;  %v509_v46 = vpop.f32.mrb[25].mxu0  ;;  %v669_v47 = vpop.f32.mrb[25].mxu1 }
 0x17d   : > { %v777_v48 = vmax.f32 %v775_v30, %v776_v38  ;;  %v889_v49 = vmax.f32 %v887_v31, %v888_v39  ;;  %v792_v50 = vmax.f32 %v509_v46, %v1272_v40  ;;  %v904_v51 = vmax.f32 %v669_v47, %v1320_v41 }
 0x17e   : > { %v782_v52 = vmax.f32 %v780_v32, %v781_v42  ;;  %v894_v53 = vmax.f32 %v892_v33, %v893_v43  ;;  %v787_v54 = vmax.f32 %v785_v34, %v786_v44  ;;  %v899_v55 = vmax.f32 %v897_v35, %v898_v45 }
 0x17f   : > { %v978_v56 = vsel %vm964_vm0, %v777_v48, %v770_v36  ;;  %v992_v57 = vsel %vm964_vm0, %v889_v49, %v882_v37  ;;  %v793_v58 = vrot.slane %v792_v50, 4  ;;  %v905_v59 = vrot.slane %v904_v51, 4  ;;  %v1275_v60 = vpop.f32.mrb[26].mxu0  ;;  %v1323_v61 = vpop.f32.mrb[26].mxu1 }
 0x180   : > { %v783_v62 = vrot.slane %v782_v52, 1  ;;  %v895_v63 = vrot.slane %v894_v53, 1  ;;  %v788_v0 = vrot.slane %v787_v54, 2  ;;  %v900_v1 = vrot.slane %v899_v55, 2  ;;  %v519_v2 = vpop.f32.mrb[27].mxu0  ;;  %v679_v3 = vpop.f32.mrb[27].mxu1 }
 0x181   : > { %v794_v4 = vmax.f32 %v792_v50, %v793_v58  ;;  %v906_v5 = vmax.f32 %v904_v51, %v905_v59  ;;  %v799_v6 = vmax.f32 %v519_v2, %v1275_v60  ;;  %v911_v7 = vmax.f32 %v679_v3, %v1323_v61 }
 0x182   : > { %v784_v8 = vmax.f32 %v782_v52, %v783_v62  ;;  %v896_v9 = vmax.f32 %v894_v53, %v895_v63  ;;  %v789_v10 = vmax.f32 %v787_v54, %v788_v0  ;;  %v901_v11 = vmax.f32 %v899_v55, %v900_v1 }
 0x183   : > { %v795_v12 = vrot.slane %v794_v4, 2  ;;  %v907_v13 = vrot.slane %v906_v5, 2  ;;  %v800_v14 = vrot.slane %v799_v6, 4  ;;  %v912_v15 = vrot.slane %v911_v7, 4  ;;  %v1278_v16 = vpop.f32.mrb[28].mxu0  ;;  %v1326_v17 = vpop.f32.mrb[28].mxu1 }
 0x184   : > { %v979_v18 = vsel %vm966_vm1, %v784_v8, %v978_v56  ;;  %v993_v19 = vsel %vm966_vm1, %v896_v9, %v992_v57  ;;  %v790_v20 = vrot.slane %v789_v10, 1  ;;  %v902_v21 = vrot.slane %v901_v11, 1  ;;  %v529_v22 = vpop.f32.mrb[29].mxu0  ;;  %v689_v23 = vpop.f32.mrb[29].mxu1 }
 0x185   : > { %v796_v24 = vmax.f32 %v794_v4, %v795_v12  ;;  %v908_v25 = vmax.f32 %v906_v5, %v907_v13  ;;  %v801_v26 = vmax.f32 %v799_v6, %v800_v14  ;;  %v913_v27 = vmax.f32 %v911_v7, %v912_v15 }
 0x186   : > { %v791_v28 = vmax.f32 %v789_v10, %v790_v20  ;;  %v903_v29 = vmax.f32 %v901_v11, %v902_v21  ;;  %v806_v30 = vmax.f32 %v529_v22, %v1278_v16  ;;  %v918_v31 = vmax.f32 %v689_v23, %v1326_v17 }
 0x187   : > { %v797_v32 = vrot.slane %v796_v24, 1  ;;  %v909_v33 = vrot.slane %v908_v25, 1  ;;  %v802_v34 = vrot.slane %v801_v26, 2  ;;  %v914_v35 = vrot.slane %v913_v27, 2  ;;  %v1281_v36 = vpop.f32.mrb[30].mxu0  ;;  %v1329_v37 = vpop.f32.mrb[30].mxu1 }
 0x188   : > { %v980_v38 = vsel %vm968_vm2, %v791_v28, %v979_v18  ;;  %v994_v39 = vsel %vm968_vm2, %v903_v29, %v993_v19  ;;  %v807_v40 = vrot.slane %v806_v30, 4  ;;  %v919_v41 = vrot.slane %v918_v31, 4  ;;  %v539_v42 = vpop.f32.mrb[31].mxu0  ;;  %v699_v43 = vpop.f32.mrb[31].mxu1 }
 0x189   : > { %v798_v44 = vmax.f32 %v796_v24, %v797_v32  ;;  %v910_v45 = vmax.f32 %v908_v25, %v909_v33  ;;  %v803_v46 = vmax.f32 %v801_v26, %v802_v34  ;;  %v915_v47 = vmax.f32 %v913_v27, %v914_v35 }
 0x18a   : > { %v808_v48 = vmax.f32 %v806_v30, %v807_v40  ;;  %v920_v49 = vmax.f32 %v918_v31, %v919_v41  ;;  %v813_v50 = vmax.f32 %v539_v42, %v1281_v36  ;;  %v925_v51 = vmax.f32 %v699_v43, %v1329_v37 }
 0x18b   : > { %v981_v52 = vsel %vm970_vm3, %v798_v44, %v980_v38  ;;  %v995_v53 = vsel %vm970_vm3, %v910_v45, %v994_v39  ;;  %v804_v54 = vrot.slane %v803_v46, 1  ;;  %v916_v55 = vrot.slane %v915_v47, 1 }
 0x18c   : > { %v809_v56 = vrot.slane %v808_v48, 2  ;;  %v921_v57 = vrot.slane %v920_v49, 2  ;;  %v814_v58 = vrot.slane %v813_v50, 4  ;;  %v926_v59 = vrot.slane %v925_v51, 4 }
 0x18d   : > { %v805_v60 = vmax.f32 %v803_v46, %v804_v54  ;;  %v917_v61 = vmax.f32 %v915_v47, %v916_v55 }
 0x18e   : > { %v810_v62 = vmax.f32 %v808_v48, %v809_v56  ;;  %v922_v63 = vmax.f32 %v920_v49, %v921_v57  ;;  %v815_v0 = vmax.f32 %v813_v50, %v814_v58  ;;  %v927_v1 = vmax.f32 %v925_v51, %v926_v59 }
 0x18f   : > { %v982_v2 = vsel %vm972_vm4, %v805_v60, %v981_v52  ;;  %v996_v3 = vsel %vm972_vm4, %v917_v61, %v995_v53 }
 0x190   : > { %v811_v4 = vrot.slane %v810_v62, 1  ;;  %v923_v5 = vrot.slane %v922_v63, 1  ;;  %v816_v6 = vrot.slane %v815_v0, 2  ;;  %v928_v7 = vrot.slane %v927_v1, 2 }
 0x192   : > { %v812_v8 = vmax.f32 %v810_v62, %v811_v4  ;;  %v924_v9 = vmax.f32 %v922_v63, %v923_v5  ;;  %v817_v10 = vmax.f32 %v815_v0, %v816_v6  ;;  %v929_v11 = vmax.f32 %v927_v1, %v928_v7 }
 0x194   : > { %v983_v12 = vsel %vm974_vm5, %v812_v8, %v982_v2  ;;  %v997_v13 = vsel %vm974_vm5, %v924_v9, %v996_v3  ;;  %v818_v14 = vrot.slane %v817_v10, 1  ;;  %v930_v15 = vrot.slane %v929_v11, 1 }
 0x196   : > { %v819_v16 = vmax.f32 %v817_v10, %v818_v14  ;;  %v931_v17 = vmax.f32 %v929_v11, %v930_v15 }
 0x198   : > { %v984_v18 = vsel %vm976_vm6, %v819_v16, %v983_v12  ;;  %v998_v19 = vsel %vm976_vm6, %v931_v17, %v997_v13 }
 0x199   : > { %1004 = vst [vmem:[%s1831_s17 + $0x8] sm:$0xff] %v984_v18  ;;  %1006 = vst [vmem:[%s1831_s17 + $0x18] sm:$0xff] %v998_v19 }
 0x19a   : > { %1510 = shalt.err (!%p1507_p7)
}
 0x19b   : > { %s1511_s18 = scalar_lea.hbm %s1852_s23, 512  ;;  %s1515_s26 = scalar_lea.hbm %s1904_s2, 1024 }
 0x19c   : > { %p1512_p9 = scmp.ne.s32.totalorder %s1852_s23, %s1511_s18  ;;  %p1516_p5 = scmp.lt.u32.totalorder %s1852_s23, %s1904_s2 }
 0x19d   : > { %p1517_p11 = scmp.lt.u32.totalorder %s1515_s26, %s1511_s18  ;;  %p1519_p4 = scmp.lt.u32.totalorder %s1511_s18, %s1852_s23 }
 0x19e   : > { %p1513_p1 = pnand %p1512_p9, %p1685_p12 }
 0x19f   : > { %p1518_p2 = por %p1517_p11, %p1516_p5 }
 0x1a0   : > { %p1514_p0 = pneg %p1513_p1 }
 0x1a1   : > { %p1520_p6 = por %p1519_p4, %p1518_p2 }
 0x1a3   : > { %p1521_p8 = pnand %p1520_p6, %p1514_p0 }
 0x1a5   : > { %1524 = shalt.err (!%p1521_p8)
}
 0x1a6   : > { %s1574_s3 = smov 128   ;;  %s1575_s15 = smov 8  }
 0x1a7   : > { %1384 = dma.vmem_to_hbm [thread:$0]  (%p1685_p12), %s1854_s5, 512, %s1852_s23, %s1008_s13, %s1574_s3, %s1574_s3, %s1575_s15  }
 0x1a8 PF: > { %s1036_s17 = sand.u32 1, %s1555_s9   ;;  %p1919_p10 = scmp.ne.s32.totalorder %s1909_s16, 0 }
 0x1a9   : > { %p1920_p13 = scmp.ge.s32.totalorder %s1567_s12, 2  ;;  %s1037_s4 = scalar_lea.sflag [#allocation4], %s1036_s17 }
 0x1ab   : > { %p1395_p3 = pnand %p1920_p13, %p1919_p10 }
 0x1ad   : > { %1550 = dma.done.wait (!%p1395_p3), %s1037_s4, 512  }
 0x1ae   : > { %1552 = vsyncadd (!%p1395_p3), %s1037_s4, 4294966784  ;;  %p16_p7 = scmp.ge.s32.totalorder %s1647_s21, 4   ;;  %s1921_s9 = smov %s1559_s10 }
 0x1af   : > { %s1922_s10 = smov %s1563_s11  ;;  %s1923_s11 = smov %s1681_s8 }
 0x1b0   : > { %s1924_s12 = smov %s1647_s21  ;;  %18 = sbr.rel (!%p16_p7) target bundleno = 6 (0x6), region = 77 }
 0x1b7   :  { %1042 = vsyncpa [#allocation3], 1 }
 0x1b8   :  { %1044 = vsyncpa [#allocation3 + $0x1], 1 }
 0x1b9   :  { %1045 = vsyncpa [#allocation6], 1 }
 0x1ba   :  { %1046 = vsyncpa [#allocation4], 1 }
 0x1bb   :  { %1048 = vsyncpa [#allocation4 + $0x1], 1 }

</bundles_post_ra>
